<compile_context>
chip_gen: v5e
topology: v5e:2x2
jax: 0.10.0
libtpu: 0.0.40
codegen_flags: <defaults>
</compile_context>

<pallas_src>
import functools

import jax
import jax.numpy as jnp
from jax import lax
from jax.experimental import pallas as pl
from jax.experimental.pallas import tpu as pltpu


def _round_up(x, m):
    return ((x + m - 1) // m) * m


def _cb_loss_kernel(logits_ref, labels_ref, clsw_ref, out_ref, *, epsilon, c_true):
    tn, c_pad = logits_ref.shape
    labels = labels_ref[...]                                   # (tn, 1) int32, -1 in padded rows
    cls_w = clsw_ref[...]                                      # (1, c_pad) f32, 0 in padded lanes

    lane_idx = lax.broadcasted_iota(jnp.int32, (1, c_pad), 1)  # (1, c_pad)
    lane_valid = lane_idx < c_true                             # (1, c_pad) bool
    one_hot = lane_idx == labels                               # (tn, c_pad) bool (broadcast)

    eps_c = jnp.float32(epsilon / c_true)
    # label smoothing; padded class lanes stay exactly 0
    ls_bg = jnp.where(lane_valid, eps_c, jnp.float32(0.0))                     # (1, c_pad)
    ls = jnp.where(one_hot, jnp.float32(1.0 - epsilon) + eps_c, ls_bg)         # (tn, c_pad)

    # per-sample weight: (1-eps) * w[label] + eps  (normalized class weights sum to C)
    sw = (jnp.float32(1.0 - epsilon)
          * jnp.sum(jnp.where(one_hot, cls_w, jnp.float32(0.0)), axis=1, keepdims=True)
          + jnp.float32(epsilon))                                              # (tn, 1)
    sw = jnp.where(labels >= 0, sw, jnp.float32(0.0))          # padded rows contribute 0

    # log-softmax: 2 transcendentals / element (exp + log) + one per-row log
    x = logits_ref[...].astype(jnp.float32)
    x = jnp.where(lane_valid, x, jnp.float32(-1e30))           # padded lanes -> exp() == 0
    x = x - jnp.max(x, axis=1, keepdims=True)
    e = jnp.exp(x)
    se = jnp.sum(e, axis=1, keepdims=True)
    lse = jnp.log(se)
    log_p = jnp.maximum(x - lse, jnp.float32(-100.0))          # torch BCE clamps log at -100
    log_1mp = jnp.maximum(jnp.log(jnp.maximum(se - e, jnp.float32(0.0))) - lse,
                          jnp.float32(-100.0))

    # bce = -(ls*log_p + (1-ls)*log_1mp); padded lanes have ls == 0 and log_1mp == 0 -> exactly 0
    bce = ls * (log_1mp - log_p) - log_1mp
    out_ref[...] = sw * jnp.sum(bce, axis=1, keepdims=True)    # (tn, 1) per-row partials


def class_balanced_loss(logits, labels, beta=0.9999, gamma=0.5, epsilon=0.1,
                        loss_type="softmax"):
    """JAX/Pallas equivalent of ClassBalancedLossMod.forward (softmax variant).

    gamma is accepted but unused in the softmax variant (matches the PyTorch reference).
    """
    # TODO(synk): 'focal' calls an undefined focal_loss() in the PyTorch source and
    # 'sigmoid' is a different (non-default) path; only the 'softmax' variant is implemented.
    assert loss_type == "softmax"
    n, c = logits.shape

    # --- class counts + effective-number weights: O(N + C) work, done in plain JAX ---
    labels_i32 = labels.astype(jnp.int32)
    counts = jnp.zeros((c,), jnp.float32).at[labels_i32].add(1.0)
    eff = 1.0 - jnp.power(jnp.float32(beta), counts)
    w = (1.0 - beta) / (eff + 1e-8)
    w = w / jnp.sum(w) * c                                     # normalized weights sum to c

    # --- lane-dense padding of the class dimension ---
    # TODO(synk): for c << 128 (like the C=32 demo), 1 - c/128 of the EUP exp/log work runs
    # on padded lanes; packing several rows side-by-side in the lane dim would recover it.
    c_pad = _round_up(c, 128)
    clsw = w.reshape(1, c).astype(jnp.float32)
    if c_pad > c:
        clsw = jnp.pad(clsw, ((0, 0), (0, c_pad - c)))

    # --- row-tile sizing: target ~12 MiB live VMEM, sublane-rounded for the input dtype ---
    in_bytes = jnp.dtype(logits.dtype).itemsize
    sub = {4: 8, 2: 16, 1: 32}.get(in_bytes, 8)
    row_bytes = c_pad * (2 * in_bytes + 8 * 4)                 # double-buffered input + f32 temps
    tn = max(sub, min(1024, ((12 * 1024 * 1024) // row_bytes) // sub * sub))
    tn = min(tn, _round_up(n, sub))
    n_pad = _round_up(n, tn)
    nt = n_pad // tn

    x = logits                                                 # keep original dtype for the DMA
    if n_pad > n or c_pad > c:
        x = jnp.pad(x, ((0, n_pad - n), (0, c_pad - c)))
    labels2d = labels_i32.reshape(-1, 1)
    if n_pad > n:
        labels2d = jnp.pad(labels2d, ((0, n_pad - n), (0, 0)), constant_values=-1)

    kernel = functools.partial(_cb_loss_kernel, epsilon=float(epsilon), c_true=c)
    partial_rows = pl.pallas_call(
        kernel,
        out_shape=jax.ShapeDtypeStruct((n_pad, 1), jnp.float32),
        grid_spec=pltpu.PrefetchScalarGridSpec(
            num_scalar_prefetch=0,
            grid=(nt,),
            in_specs=[
                pl.BlockSpec((tn, c_pad), lambda t: (t, 0)),   # logits tile
                pl.BlockSpec((tn, 1), lambda t: (t, 0)),       # labels tile
                pl.BlockSpec((1, c_pad), lambda t: (0, 0)),    # class weights (resident)
            ],
            out_specs=pl.BlockSpec((tn, 1), lambda t: (t, 0)),
        ),
        compiler_params=pltpu.CompilerParams(
            dimension_semantics=("parallel",),                 # megacore sharding on v7x
            vmem_limit_bytes=32 * 1024 * 1024),
    )(x, labels2d, clsw)

    # padded rows wrote exactly 0, so a plain sum is safe
    return jnp.sum(partial_rows) * jnp.float32(1.0 / (n * c))


def _cb_loss_ref(logits, labels, beta, epsilon):
    """Pure-JAX reference with the exact PyTorch-module math (softmax -> clamped-log BCE)."""
    n, c = logits.shape
    one_hot = jax.nn.one_hot(labels, c, dtype=jnp.float32)
    counts = one_hot.sum(axis=0)
    eff = 1.0 - jnp.power(beta, counts)
    w = (1.0 - beta) / (eff + 1e-8)
    w = w / jnp.sum(w) * c
    ls = (1.0 - epsilon) * one_hot + epsilon / c
    sample_w = jnp.sum(ls * w[None, :], axis=1, keepdims=True)
    pred = jax.nn.softmax(logits.astype(jnp.float32), axis=1)
    log_p = jnp.maximum(jnp.log(pred), -100.0)
    log_1mp = jnp.maximum(jnp.log(1.0 - pred), -100.0)
    bce = -(ls * log_p + (1.0 - ls) * log_1mp)
    return jnp.sum(sample_w * bce) / (n * c)


if __name__ == "__main__":
    key = jax.random.PRNGKey(0)
    k_logits, k_labels = jax.random.split(key)

    N, C = 8, 32  # batch, no_of_classes
    logits = jax.random.normal(k_logits, (N, C), dtype=jnp.float32)
    labels = jax.random.randint(k_labels, (N,), 0, C, dtype=jnp.int32)

    loss = class_balanced_loss(logits, labels, beta=0.9999, gamma=0.5,
                               epsilon=0.1, loss_type="softmax")
    loss = jax.block_until_ready(loss)

    ref = _cb_loss_ref(logits, labels, 0.9999, 0.1)
    assert jnp.allclose(loss, ref, rtol=2e-4, atol=1e-6), (loss, ref)
    print("KERNEL_OK")
</pallas_src>

<mosaic_0001>
module attributes {stable_mosaic.version = 11 : i64} {
  func.func @_cb_loss_kernel(%arg0: i32, %arg1: memref<8x128xf32, #tpu.memory_space<vmem>>, %arg2: memref<8x1xi32, #tpu.memory_space<vmem>>, %arg3: memref<1x128xf32, #tpu.memory_space<vmem>>, %arg4: memref<8x1xf32, #tpu.memory_space<vmem>>) attributes {dimension_semantics = [#tpu.dimension_semantics<parallel>], iteration_bounds = array<i64: 1>, scalar_prefetch = 0 : i64, scratch_operands = 0 : i64, tpu.core_type = #tpu.core_type<tc>, window_params = [{transform_indices = @transform_0, window_bounds = array<i64: 8, 128>}, {transform_indices = @transform_1, window_bounds = array<i64: 8, 1>}, {pipeline_mode = #tpu.pipeline_mode<synchronous>, transform_indices = @transform_2, window_bounds = array<i64: 1, 128>}, {transform_indices = @transform_3, window_bounds = array<i64: 8, 1>}]} {
    %c0 = arith.constant 0 : index
    %c0_0 = arith.constant 0 : index
    %0 = vector.load %arg2[%c0, %c0_0] : memref<8x1xi32, #tpu.memory_space<vmem>>, vector<8x1xi32>
    %c0_1 = arith.constant 0 : index
    %c0_2 = arith.constant 0 : index
    %1 = vector.load %arg3[%c0_1, %c0_2] : memref<1x128xf32, #tpu.memory_space<vmem>>, vector<1x128xf32>
    %2 = tpu.iota {dimensions = array<i32: 1>} : vector<1x128xi32>
    %c32_i32 = arith.constant 32 : i32
    %3 = vector.broadcast %c32_i32 : i32 to vector<1x128xi32>
    %4 = arith.cmpi slt, %2, %3 : vector<1x128xi32>
    %5 = vector.broadcast %2 : vector<1x128xi32> to vector<8x128xi32>
    %6 = vector.broadcast %0 : vector<8x1xi32> to vector<8x128xi32>
    %7 = arith.cmpi eq, %5, %6 : vector<8x128xi32>
    %cst = arith.constant 3.125000e-03 : f32
    %cst_3 = arith.constant 0.000000e+00 : f32
    %8 = vector.broadcast %cst : f32 to vector<1x128xf32>
    %9 = vector.broadcast %cst_3 : f32 to vector<1x128xf32>
    %10 = arith.select %4, %8, %9 : vector<1x128xi1>, vector<1x128xf32>
    %cst_4 = arith.constant 0.899999976 : f32
    %cst_5 = arith.constant 3.125000e-03 : f32
    %11 = arith.addf %cst_4, %cst_5 : f32
    %12 = vector.broadcast %11 : f32 to vector<8x128xf32>
    %13 = vector.shape_cast %10 : vector<1x128xf32> to vector<1x128xf32>
    %14 = vector.broadcast %13 : vector<1x128xf32> to vector<8x128xf32>
    %15 = arith.select %7, %12, %14 : vector<8x128xi1>, vector<8x128xf32>
    %cst_6 = arith.constant 0.000000e+00 : f32
    %16 = vector.shape_cast %1 : vector<1x128xf32> to vector<1x128xf32>
    %17 = vector.broadcast %16 : vector<1x128xf32> to vector<8x128xf32>
    %18 = vector.broadcast %cst_6 : f32 to vector<8x128xf32>
    %19 = arith.select %7, %17, %18 : vector<8x128xi1>, vector<8x128xf32>
    %cst_7 = arith.constant dense<0.000000e+00> : vector<8xf32>
    %20 = vector.multi_reduction <add>, %19, %cst_7 [1] : vector<8x128xf32> to vector<8xf32>
    %21 = vector.shape_cast %20 : vector<8xf32> to vector<8x1xf32>
    %cst_8 = arith.constant 0.899999976 : f32
    %22 = vector.broadcast %cst_8 : f32 to vector<8x1xf32>
    %23 = arith.mulf %22, %21 : vector<8x1xf32>
    %cst_9 = arith.constant 1.000000e-01 : f32
    %24 = vector.broadcast %cst_9 : f32 to vector<8x1xf32>
    %25 = arith.addf %23, %24 : vector<8x1xf32>
    %c0_i32 = arith.constant 0 : i32
    %26 = vector.broadcast %c0_i32 : i32 to vector<8x1xi32>
    %27 = arith.cmpi sge, %0, %26 : vector<8x1xi32>
    %cst_10 = arith.constant 0.000000e+00 : f32
    %28 = vector.broadcast %cst_10 : f32 to vector<8x1xf32>
    %29 = arith.select %27, %25, %28 : vector<8x1xi1>, vector<8x1xf32>
    %c0_11 = arith.constant 0 : index
    %c0_12 = arith.constant 0 : index
    %30 = vector.load %arg1[%c0_11, %c0_12] : memref<8x128xf32, #tpu.memory_space<vmem>>, vector<8x128xf32>
    %cst_13 = arith.constant -1.000000e+30 : f32
    %31 = vector.shape_cast %4 : vector<1x128xi1> to vector<1x128xi1>
    %32 = vector.broadcast %31 : vector<1x128xi1> to vector<8x128xi1>
    %33 = vector.broadcast %cst_13 : f32 to vector<8x128xf32>
    %34 = arith.select %32, %30, %33 : vector<8x128xi1>, vector<8x128xf32>
    %cst_14 = arith.constant dense<0xFF800000> : vector<8xf32>
    %35 = vector.multi_reduction <maximumf>, %34, %cst_14 [1] : vector<8x128xf32> to vector<8xf32>
    %36 = vector.shape_cast %35 : vector<8xf32> to vector<8x1xf32>
    %37 = vector.broadcast %36 : vector<8x1xf32> to vector<8x128xf32>
    %38 = arith.subf %34, %37 : vector<8x128xf32>
    %39 = math.exp %38 : vector<8x128xf32>
    %cst_15 = arith.constant dense<0.000000e+00> : vector<8xf32>
    %40 = vector.multi_reduction <add>, %39, %cst_15 [1] : vector<8x128xf32> to vector<8xf32>
    %41 = vector.shape_cast %40 : vector<8xf32> to vector<8x1xf32>
    %42 = math.log %41 : vector<8x1xf32>
    %43 = vector.broadcast %42 : vector<8x1xf32> to vector<8x128xf32>
    %44 = arith.subf %38, %43 : vector<8x128xf32>
    %cst_16 = arith.constant -1.000000e+02 : f32
    %45 = vector.broadcast %cst_16 : f32 to vector<8x128xf32>
    %46 = arith.maximumf %44, %45 : vector<8x128xf32>
    %47 = vector.broadcast %41 : vector<8x1xf32> to vector<8x128xf32>
    %48 = arith.subf %47, %39 : vector<8x128xf32>
    %cst_17 = arith.constant 0.000000e+00 : f32
    %49 = vector.broadcast %cst_17 : f32 to vector<8x128xf32>
    %50 = arith.maximumf %48, %49 : vector<8x128xf32>
    %51 = math.log %50 : vector<8x128xf32>
    %52 = vector.broadcast %42 : vector<8x1xf32> to vector<8x128xf32>
    %53 = arith.subf %51, %52 : vector<8x128xf32>
    %cst_18 = arith.constant -1.000000e+02 : f32
    %54 = vector.broadcast %cst_18 : f32 to vector<8x128xf32>
    %55 = arith.maximumf %53, %54 : vector<8x128xf32>
    %56 = arith.subf %55, %46 : vector<8x128xf32>
    %57 = arith.mulf %15, %56 : vector<8x128xf32>
    %58 = arith.subf %57, %55 : vector<8x128xf32>
    %cst_19 = arith.constant dense<0.000000e+00> : vector<8xf32>
    %59 = vector.multi_reduction <add>, %58, %cst_19 [1] : vector<8x128xf32> to vector<8xf32>
    %60 = vector.shape_cast %59 : vector<8xf32> to vector<8x1xf32>
    %61 = arith.mulf %29, %60 : vector<8x1xf32>
    %c0_20 = arith.constant 0 : index
    %c0_21 = arith.constant 0 : index
    %62 = vector.load %arg4[%c0_20, %c0_21] : memref<8x1xf32, #tpu.memory_space<vmem>>, vector<8x1xf32>
    tpu.vector_store %arg4[%c0_20, %c0_21], %61 {strides = array<i32>} : memref<8x1xf32, #tpu.memory_space<vmem>>, vector<8x1xf32>,
    return
  }
  func.func @transform_0(%arg0: i32) -> (i32, i32) {
    %c0_i32 = arith.constant 0 : i32
    %c0_i32_0 = arith.constant 0 : i32
    return %arg0, %c0_i32 : i32, i32
  }
  func.func @transform_1(%arg0: i32) -> (i32, i32) {
    %c0_i32 = arith.constant 0 : i32
    %c0_i32_0 = arith.constant 0 : i32
    return %arg0, %c0_i32 : i32, i32
  }
  func.func @transform_2(%arg0: i32) -> (i32, i32) {
    %c0_i32 = arith.constant 0 : i32
    %c0_i32_0 = arith.constant 0 : i32
    %c0_i32_1 = arith.constant 0 : i32
    return %c0_i32, %c0_i32_0 : i32, i32
  }
  func.func @transform_3(%arg0: i32) -> (i32, i32) {
    %c0_i32 = arith.constant 0 : i32
    %c0_i32_0 = arith.constant 0 : i32
    return %arg0, %c0_i32 : i32, i32
  }
}

</mosaic_0001>

<bundles_post_ra>
// kernel: tpu_custom_call.1
= control target key start
LH: loop header
LB: loop body
LE: loop exit
PB: predicated region body
PF: predicated region fallthrough
CT: control target
= control target key end

     0   :  { %v16_v0 = vlaneseq  ;;  %v79_v5 = vmov 0   ;;  %v80_v21 = vmov 0.0   ;;  %vm62_vm3 = vcmask 7168   ;;  %s117_s0 = inlined_call_operand.vmem [shape: f32[8,128], index: 0, kind: input, shape index: {}]   ;;  %s118_s1 = inlined_call_operand.vmem [shape: s32[8,1], index: 1, kind: input, shape index: {}]   ;;  %s119_s2 = inlined_call_operand.vmem [shape: f32[1,128], index: 2, kind: input, shape index: {}]   ;;  %s120_s3 = inlined_call_operand.vmem [shape: f32[8,1], index: 3, kind: output, shape index: {}]  }
   0x1   :  { %v35_v2 = vld [vmem:[%s117_s0] sm:$0xff]  ;;  %70 = vset.pattern.permute.xlu1 %v79_v5  ;;  %71 = vset.pattern.permute.xlu0 %v79_v5 }
   0x2   :  { %v17_v1 = vand.u32 127, %v16_v0  ;;  %v14_v4 = vld [vmem:[%s118_s1] sm:$0xff] }
   0x3   :  { %20 = vperm.xlu1 %70, %v14_v4   ;;  %v72_v11 = vld [vmem:[%s119_s2] ss:$0 sm:$0xff]  ;;  %vm33_vm2 = vcmp.ge.s32.totalorder %v14_v4, 0 }
   0x4   :  { %vm18_vm0 = vcmp.lt.s32.totalorder %v17_v1, 32 }
   0x5   :  { %v38_v3 = vsel %vm18_vm0, %v35_v2, -1e+30  ;;  %v23_v22 = vsel %vm18_vm0, 0.003125, %v80_v21 }
   0x6   :  { %39 = vmax.xlane.f32.xlu0 %v38_v3 }
  0x75   :  { %v21_v10 = vpop.permute.xlu1 %20 }
  0x76   :  { %vm22_vm1 = vcmp.eq.s32.totalorder %v17_v1, %v21_v10 }
  0x77   :  { %v28_v12 = vsel %vm22_vm1, %v72_v11, 0.0  ;;  %v24_v26 = vsel %vm22_vm1, 0.903125, %v23_v22 }
  0x78   :  { %29 = vadd.xlane.f32.xlu1 %v28_v12 }
  0x79   :  { %v40_v6 = vpop.xlane.xlu0 %39 }
  0x7a   :  { %v41_v7 = vsub.f32 %v38_v3, %v40_v6 }
  0x7c   :  { %v42_v8 = vmul.f32 1.442695, %v41_v7 }
  0x7e   :  { %73 = vpow2.f32 %v42_v8 }
  0x84   :  { %v74_v9 = vpop.eup %73 }
  0x85   :  { %44 = vadd.xlane.f32.xlu0 %v74_v9 }
  0xeb   :  { %v30_v30 = vpop.xlane.xlu1 %29 }
  0xec   :  { %v31_v31 = vmul.f32 0.9, %v30_v30 }
  0xee   :  { %v32_v32 = vadd.f32 0.1, %v31_v31 }
  0xf0   :  { %v34_v33 = vsel %vm33_vm2, %v32_v32, 0.0 }
  0xf8   :  { %v45_v13 = vpop.xlane.xlu0 %44 }
  0xf9   :  { %75 = vlog2.f32 %v45_v13  ;;  %v50_v14 = vsub.f32 %v45_v13, %v74_v9 }
  0xfb   :  { %v51_v15 = vmax.f32 %v50_v14, 0.0 }
  0xfd   :  { %77 = vlog2.f32 %v51_v15 }
  0xff   :  { %v76_v16 = vpop.eup %75 }
 0x100   :  { %v47_v17 = vmul.f32 0.6931472, %v76_v16 }
 0x102   :  { %v48_v19 = vsub.f32 %v41_v7, %v47_v17 }
 0x103   :  { %v78_v18 = vpop.eup %77 }
 0x104   :  { %v53_v20 = vmul.f32 0.6931472, %v78_v18  ;;  %v49_v24 = vmax.f32 %v48_v19, -100.0 }
 0x106   :  { %v54_v23 = vsub.f32 %v53_v20, %v47_v17 }
 0x108   :  { %v55_v25 = vmax.f32 %v54_v23, -100.0 }
 0x10a   :  { %v56_v27 = vsub.f32 %v55_v25, %v49_v24 }
 0x10c   :  { %v57_v28 = vmul.f32 %v56_v27, %v24_v26 }
 0x10e   :  { %v58_v29 = vsub.f32 %v57_v28, %v55_v25 }
 0x110   :  { %59 = vadd.xlane.f32.xlu2 %v58_v29 }
 0x183   :  { %v60_v34 = vpop.xlane.xlu2 %59 }
 0x184   :  { %v61_v35 = vmul.f32 %v60_v34, %v34_v33 }
 0x186   :  { %63 = vst.msk [vmem:[%s120_s3] sm:$0xff] %vm62_vm3, %v61_v35 }

</bundles_post_ra>
